<compile_context>
chip_gen: v5e
topology: v5e:2x2
jax: 0.10.0
libtpu: 0.0.40
codegen_flags: <defaults>
</compile_context>

<pallas_src>
import functools

import jax
import jax.numpy as jnp
from jax.experimental import pallas as pl
from jax.experimental.pallas import tpu as pltpu


def _round_up(x, m):
    return (x + m - 1) // m * m


# --------------------------------------------------------------------------
# Fused MLP kernel: one row-tile of x, all layers unrolled in the body.
# refs = (x_ref, w0, b0, w1, b1, ..., w_{L-1}, b_{L-1}, o_ref)
# --------------------------------------------------------------------------
def _mlp_kernel(*refs, num_layers):
    x_ref = refs[0]
    o_ref = refs[-1]
    wb = refs[1:-1]

    h = x_ref[...]                                     # (tile_m, d0_pad), MXU dtype
    for i in range(num_layers):
        w_ref = wb[2 * i]
        b_ref = wb[2 * i + 1]
        y = jnp.dot(h, w_ref[...], preferred_element_type=jnp.float32)
        y = y + b_ref[...]                             # f32 bias add (VPU)
        if i < num_layers - 1:
            y = jnp.maximum(y, 0.0)                    # ReLU in f32 (VPU)
            h = y.astype(w_ref.dtype)                  # back to MXU dtype
        else:
            h = y                                      # last layer: no activation
    o_ref[...] = h.astype(o_ref.dtype)
    # TODO(synk): for very deep / very wide MLPs route activations through an
    # explicit ping-pong VMEM scratch instead of carrying `h` through the
    # unrolled Python loop (bounds live ranges / spills on v7x's 64 MiB VMEM).


# --------------------------------------------------------------------------
# Wrapper: flatten leading dims, pad rows/features, one pallas_call.
# weights[i] is in PyTorch nn.Linear layout (out_features, in_features).
# --------------------------------------------------------------------------
def mlp_forward(x, weights, biases, *, tile_m=1024, mxu_dtype=jnp.bfloat16):
    num_layers = len(weights)
    *lead, d_in0 = x.shape
    M = 1
    for s in lead:
        M *= s
    out_dim = weights[-1].shape[0]

    # Feature dims padded to lane multiples (128) -> lane-dense matmuls/stores.
    dims = [d_in0] + [w.shape[0] for w in weights]
    dims_pad = [_round_up(d, 128) for d in dims]

    mxu_bytes = jnp.dtype(mxu_dtype).itemsize
    out_bytes = mxu_bytes                              # output stored in MXU dtype
    sub = max(8, 32 // mxu_bytes)                      # sublane packing: 16 for bf16

    # ---- VMEM budget -------------------------------------------------------
    try:
        phys_vmem = int(pltpu.get_tpu_info().vmem_capacity_bytes)
    except Exception:
        phys_vmem = 64 << 20                           # conservative (v7x per-TC)
    budget = int(phys_vmem * 0.70)

    def footprint(tm):
        f = tm * dims_pad[0] * mxu_bytes * 2           # input tile (double-buffered)
        f += tm * dims_pad[-1] * out_bytes * 2         # output tile (double-buffered)
        for li in range(num_layers):
            f += dims_pad[li] * dims_pad[li + 1] * mxu_bytes  # weights (1x resident)
            f += dims_pad[li + 1] * 4                         # f32 bias
        f += 2 * tm * max(dims_pad) * 4                # f32 intermediates headroom
        return f

    # ---- row tiling --------------------------------------------------------
    tile_m = max(sub, (tile_m // sub) * sub)
    M_sub = _round_up(M, sub)
    if tile_m >= M_sub:
        # Everything fits in one tile; still split into 2 grid steps when there
        # is enough work so both v7x TensorCores get a "parallel" step.
        tile_m = _round_up((M_sub + 1) // 2, sub) if M_sub >= 4 * sub else M_sub
    while tile_m > sub and footprint(tile_m) > budget:
        tile_m = max(sub, _round_up(tile_m // 2, sub))
    # TODO(synk): if the resident weights alone exceed the VMEM budget (huge
    # hidden dims), split the widest layer over a K grid axis instead of
    # keeping every weight fully resident.

    M_pad = _round_up(M, tile_m)
    vmem_limit = int(min(phys_vmem, max(footprint(tile_m) * 5 // 4, 32 << 20)))

    # ---- operands: cast first, pad only when needed -------------------------
    x2d = x.reshape(M, d_in0).astype(mxu_dtype)
    if (M_pad, dims_pad[0]) != (M, d_in0):
        x2d = jnp.pad(x2d, ((0, M_pad - M), (0, dims_pad[0] - d_in0)))

    w_args = []
    for i, (w, b) in enumerate(zip(weights, biases)):
        din, dout = dims_pad[i], dims_pad[i + 1]
        wt = jnp.transpose(w, (1, 0)).astype(mxu_dtype)        # (d_in, d_out)
        if wt.shape != (din, dout):
            wt = jnp.pad(wt, ((0, din - wt.shape[0]), (0, dout - wt.shape[1])))
        bp = b.astype(jnp.float32)
        if bp.shape[0] != dout:
            bp = jnp.pad(bp, (0, dout - bp.shape[0]))
        w_args += [wt, bp.reshape(1, dout)]

    def build_in_specs(single_buffer_params):
        kwargs = {}
        if single_buffer_params:
            # Grid-invariant operands: no point double-buffering them.
            kwargs = dict(pipeline_mode=pl.Buffered(buffer_count=1))
        specs = [pl.BlockSpec((tile_m, dims_pad[0]), lambda i: (i, 0))]
        for li in range(num_layers):
            din, dout = dims_pad[li], dims_pad[li + 1]
            specs.append(pl.BlockSpec((din, dout), lambda i: (0, 0), **kwargs))
            specs.append(pl.BlockSpec((1, dout), lambda i: (0, 0), **kwargs))
        return specs

    kernel = functools.partial(_mlp_kernel, num_layers=num_layers)

    def run(single_buffer_params):
        return pl.pallas_call(
            kernel,
            out_shape=jax.ShapeDtypeStruct((M_pad, dims_pad[-1]), mxu_dtype),
            grid_spec=pltpu.PrefetchScalarGridSpec(
                num_scalar_prefetch=0,
                grid=(M_pad // tile_m,),
                in_specs=build_in_specs(single_buffer_params),
                out_specs=pl.BlockSpec((tile_m, dims_pad[-1]), lambda i: (i, 0)),
            ),
            compiler_params=pltpu.CompilerParams(
                dimension_semantics=("parallel",),
                vmem_limit_bytes=vmem_limit,
            ),
        )(x2d, *w_args)

    try:
        out = run(True)      # single-buffered resident weights/biases
    except Exception:        # this jax build rejects pipeline_mode -> default
        out = run(False)

    out = out[:M, :out_dim].astype(x.dtype)
    return out.reshape(*lead, out_dim)


# --------------------------------------------------------------------------
# Deterministic synthetic parameters (PyTorch nn.Linear layout) + reference.
# --------------------------------------------------------------------------
def init_mlp_params(key, input_dim, hidden_dim, output_dim, num_layers):
    h = [hidden_dim] * (num_layers - 1)
    in_dims = [input_dim] + h
    out_dims = h + [output_dim]
    weights, biases = [], []
    for n, k in zip(in_dims, out_dims):
        key, kw, kb = jax.random.split(key, 3)
        weights.append(0.1 * jax.random.normal(kw, (k, n), jnp.float32))  # (out, in)
        biases.append(0.1 * jax.random.normal(kb, (k,), jnp.float32))
    return weights, biases


def mlp_reference(x, weights, biases):
    num_layers = len(weights)
    h = x.astype(jnp.float32)
    for i, (w, b) in enumerate(zip(weights, biases)):
        h = h @ jnp.transpose(w, (1, 0)) + b
        if i < num_layers - 1:
            h = jnp.maximum(h, 0.0)
    return h


if __name__ == "__main__":
    key = jax.random.PRNGKey(0)
    kx, kp = jax.random.split(key)

    # Small shapes consistent with the module: x is (..., input_dim).
    batch, seq = 2, 8
    input_dim, hidden_dim, output_dim, num_layers = 32, 32, 4, 3

    x = jax.random.normal(kx, (batch, seq, input_dim), jnp.float32)
    weights, biases = init_mlp_params(kp, input_dim, hidden_dim,
                                      output_dim, num_layers)

    out = jax.block_until_ready(mlp_forward(x, weights, biases))
    ref = jax.block_until_ready(mlp_reference(x, weights, biases))

    assert out.shape == (batch, seq, output_dim), out.shape
    # bf16 MXU operands + bf16 output store -> small deviation vs f32 reference.
    assert jnp.allclose(out, ref, rtol=2e-2, atol=2e-2), (
        float(jnp.max(jnp.abs(out - ref))))

    print("KERNEL_OK")
</pallas_src>

<mosaic_0001>
module attributes {stable_mosaic.version = 11 : i64} {
  func.func @_mlp_kernel(%arg0: i32, %arg1: memref<16x128xbf16, #tpu.memory_space<vmem>>, %arg2: memref<128x128xbf16, #tpu.memory_space<vmem>>, %arg3: memref<1x128xf32, #tpu.memory_space<vmem>>, %arg4: memref<128x128xbf16, #tpu.memory_space<vmem>>, %arg5: memref<1x128xf32, #tpu.memory_space<vmem>>, %arg6: memref<128x128xbf16, #tpu.memory_space<vmem>>, %arg7: memref<1x128xf32, #tpu.memory_space<vmem>>, %arg8: memref<16x128xbf16, #tpu.memory_space<vmem>>) attributes {dimension_semantics = [#tpu.dimension_semantics<parallel>], iteration_bounds = array<i64: 1>, scalar_prefetch = 0 : i64, scratch_operands = 0 : i64, tpu.core_type = #tpu.core_type<tc>, window_params = [{transform_indices = @transform_0, window_bounds = array<i64: 16, 128>}, {pipeline_mode = #tpu.pipeline_mode<synchronous>, transform_indices = @transform_1, window_bounds = array<i64: 128, 128>}, {pipeline_mode = #tpu.pipeline_mode<synchronous>, transform_indices = @transform_2, window_bounds = array<i64: 1, 128>}, {pipeline_mode = #tpu.pipeline_mode<synchronous>, transform_indices = @transform_3, window_bounds = array<i64: 128, 128>}, {pipeline_mode = #tpu.pipeline_mode<synchronous>, transform_indices = @transform_4, window_bounds = array<i64: 1, 128>}, {pipeline_mode = #tpu.pipeline_mode<synchronous>, transform_indices = @transform_5, window_bounds = array<i64: 128, 128>}, {pipeline_mode = #tpu.pipeline_mode<synchronous>, transform_indices = @transform_6, window_bounds = array<i64: 1, 128>}, {transform_indices = @transform_7, window_bounds = array<i64: 16, 128>}]} {
    %c0 = arith.constant 0 : index
    %c0_0 = arith.constant 0 : index
    %0 = vector.load %arg1[%c0, %c0_0] : memref<16x128xbf16, #tpu.memory_space<vmem>>, vector<16x128xbf16>
    %c0_1 = arith.constant 0 : index
    %c0_2 = arith.constant 0 : index
    %1 = vector.load %arg2[%c0_1, %c0_2] : memref<128x128xbf16, #tpu.memory_space<vmem>>, vector<128x128xbf16>
    %cst = arith.constant dense<0.000000e+00> : vector<16x128xf32>
    %2 = tpu.matmul %0, %1, %cst {dimension_numbers = #tpu.dot_dimension_numbers<[1], [0], [0], [1], [0, 0, 1, 1], [], []>} : vector<16x128xbf16>, vector<128x128xbf16>, vector<16x128xf32> -> vector<16x128xf32>
    %c0_3 = arith.constant 0 : index
    %c0_4 = arith.constant 0 : index
    %3 = vector.load %arg3[%c0_3, %c0_4] : memref<1x128xf32, #tpu.memory_space<vmem>>, vector<1x128xf32>
    %4 = vector.broadcast %3 : vector<1x128xf32> to vector<16x128xf32>
    %5 = arith.addf %2, %4 : vector<16x128xf32>
    %cst_5 = arith.constant 0.000000e+00 : f32
    %6 = vector.broadcast %cst_5 : f32 to vector<16x128xf32>
    %7 = arith.maximumf %5, %6 : vector<16x128xf32>
    %8 = arith.truncf %7 : vector<16x128xf32> to vector<16x128xbf16>
    %c0_6 = arith.constant 0 : index
    %c0_7 = arith.constant 0 : index
    %9 = vector.load %arg4[%c0_6, %c0_7] : memref<128x128xbf16, #tpu.memory_space<vmem>>, vector<128x128xbf16>
    %cst_8 = arith.constant dense<0.000000e+00> : vector<16x128xf32>
    %10 = tpu.matmul %8, %9, %cst_8 {dimension_numbers = #tpu.dot_dimension_numbers<[1], [0], [0], [1], [0, 0, 1, 1], [], []>} : vector<16x128xbf16>, vector<128x128xbf16>, vector<16x128xf32> -> vector<16x128xf32>
    %c0_9 = arith.constant 0 : index
    %c0_10 = arith.constant 0 : index
    %11 = vector.load %arg5[%c0_9, %c0_10] : memref<1x128xf32, #tpu.memory_space<vmem>>, vector<1x128xf32>
    %12 = vector.broadcast %11 : vector<1x128xf32> to vector<16x128xf32>
    %13 = arith.addf %10, %12 : vector<16x128xf32>
    %cst_11 = arith.constant 0.000000e+00 : f32
    %14 = vector.broadcast %cst_11 : f32 to vector<16x128xf32>
    %15 = arith.maximumf %13, %14 : vector<16x128xf32>
    %16 = arith.truncf %15 : vector<16x128xf32> to vector<16x128xbf16>
    %c0_12 = arith.constant 0 : index
    %c0_13 = arith.constant 0 : index
    %17 = vector.load %arg6[%c0_12, %c0_13] : memref<128x128xbf16, #tpu.memory_space<vmem>>, vector<128x128xbf16>
    %cst_14 = arith.constant dense<0.000000e+00> : vector<16x128xf32>
    %18 = tpu.matmul %16, %17, %cst_14 {dimension_numbers = #tpu.dot_dimension_numbers<[1], [0], [0], [1], [0, 0, 1, 1], [], []>} : vector<16x128xbf16>, vector<128x128xbf16>, vector<16x128xf32> -> vector<16x128xf32>
    %c0_15 = arith.constant 0 : index
    %c0_16 = arith.constant 0 : index
    %19 = vector.load %arg7[%c0_15, %c0_16] : memref<1x128xf32, #tpu.memory_space<vmem>>, vector<1x128xf32>
    %20 = vector.broadcast %19 : vector<1x128xf32> to vector<16x128xf32>
    %21 = arith.addf %18, %20 : vector<16x128xf32>
    %22 = arith.truncf %21 : vector<16x128xf32> to vector<16x128xbf16>
    %c0_17 = arith.constant 0 : index
    %c0_18 = arith.constant 0 : index
    %23 = vector.load %arg8[%c0_17, %c0_18] : memref<16x128xbf16, #tpu.memory_space<vmem>>, vector<16x128xbf16>
    tpu.vector_store %arg8[%c0_17, %c0_18], %22 {strides = array<i32>} : memref<16x128xbf16, #tpu.memory_space<vmem>>, vector<16x128xbf16>,
    return
  }
  func.func @transform_0(%arg0: i32) -> (i32, i32) {
    %c0_i32 = arith.constant 0 : i32
    %c0_i32_0 = arith.constant 0 : i32
    return %arg0, %c0_i32 : i32, i32
  }
  func.func @transform_1(%arg0: i32) -> (i32, i32) {
    %c0_i32 = arith.constant 0 : i32
    %c0_i32_0 = arith.constant 0 : i32
    %c0_i32_1 = arith.constant 0 : i32
    return %c0_i32, %c0_i32_0 : i32, i32
  }
  func.func @transform_2(%arg0: i32) -> (i32, i32) {
    %c0_i32 = arith.constant 0 : i32
    %c0_i32_0 = arith.constant 0 : i32
    %c0_i32_1 = arith.constant 0 : i32
    return %c0_i32, %c0_i32_0 : i32, i32
  }
  func.func @transform_3(%arg0: i32) -> (i32, i32) {
    %c0_i32 = arith.constant 0 : i32
    %c0_i32_0 = arith.constant 0 : i32
    %c0_i32_1 = arith.constant 0 : i32
    return %c0_i32, %c0_i32_0 : i32, i32
  }
  func.func @transform_4(%arg0: i32) -> (i32, i32) {
    %c0_i32 = arith.constant 0 : i32
    %c0_i32_0 = arith.constant 0 : i32
    %c0_i32_1 = arith.constant 0 : i32
    return %c0_i32, %c0_i32_0 : i32, i32
  }
  func.func @transform_5(%arg0: i32) -> (i32, i32) {
    %c0_i32 = arith.constant 0 : i32
    %c0_i32_0 = arith.constant 0 : i32
    %c0_i32_1 = arith.constant 0 : i32
    return %c0_i32, %c0_i32_0 : i32, i32
  }
  func.func @transform_6(%arg0: i32) -> (i32, i32) {
    %c0_i32 = arith.constant 0 : i32
    %c0_i32_0 = arith.constant 0 : i32
    %c0_i32_1 = arith.constant 0 : i32
    return %c0_i32, %c0_i32_0 : i32, i32
  }
  func.func @transform_7(%arg0: i32) -> (i32, i32) {
    %c0_i32 = arith.constant 0 : i32
    %c0_i32_0 = arith.constant 0 : i32
    return %arg0, %c0_i32 : i32, i32
  }
}

module attributes {stable_mosaic.version = 11 : i64} {
  func.func @_mlp_kernel(%arg0: i32, %arg1: memref<16x128xbf16, #tpu.memory_space<vmem>>, %arg2: memref<128x128xbf16, #tpu.memory_space<vmem>>, %arg3: memref<1x128xf32, #tpu.memory_space<vmem>>, %arg4: memref<128x128xbf16, #tpu.memory_space<vmem>>, %arg5: memref<1x128xf32, #tpu.memory_space<vmem>>, %arg6: memref<128x128xbf16, #tpu.memory_space<vmem>>, %arg7: memref<1x128xf32, #tpu.memory_space<vmem>>, %arg8: memref<16x128xbf16, #tpu.memory_space<vmem>>) attributes {dimension_semantics = [#tpu.dimension_semantics<parallel>], iteration_bounds = array<i64: 1>, scalar_prefetch = 0 : i64, scratch_operands = 0 : i64, tpu.core_type = #tpu.core_type<tc>, window_params = [{transform_indices = @transform_0, window_bounds = array<i64: 16, 128>}, {pipeline_mode = #tpu.pipeline_mode<synchronous>, transform_indices = @transform_1, window_bounds = array<i64: 128, 128>}, {pipeline_mode = #tpu.pipeline_mode<synchronous>, transform_indices = @transform_2, window_bounds = array<i64: 1, 128>}, {pipeline_mode = #tpu.pipeline_mode<synchronous>, transform_indices = @transform_3, window_bounds = array<i64: 128, 128>}, {pipeline_mode = #tpu.pipeline_mode<synchronous>, transform_indices = @transform_4, window_bounds = array<i64: 1, 128>}, {pipeline_mode = #tpu.pipeline_mode<synchronous>, transform_indices = @transform_5, window_bounds = array<i64: 128, 128>}, {pipeline_mode = #tpu.pipeline_mode<synchronous>, transform_indices = @transform_6, window_bounds = array<i64: 1, 128>}, {transform_indices = @transform_7, window_bounds = array<i64: 16, 128>}]} {
    %c0 = arith.constant 0 : index
    %c0_0 = arith.constant 0 : index
    %0 = vector.load %arg1[%c0, %c0_0] : memref<16x128xbf16, #tpu.memory_space<vmem>>, vector<16x128xbf16>
    %c0_1 = arith.constant 0 : index
    %c0_2 = arith.constant 0 : index
    %1 = vector.load %arg2[%c0_1, %c0_2] : memref<128x128xbf16, #tpu.memory_space<vmem>>, vector<128x128xbf16>
    %cst = arith.constant dense<0.000000e+00> : vector<16x128xf32>
    %2 = tpu.matmul %0, %1, %cst {dimension_numbers = #tpu.dot_dimension_numbers<[1], [0], [0], [1], [0, 0, 1, 1], [], []>} : vector<16x128xbf16>, vector<128x128xbf16>, vector<16x128xf32> -> vector<16x128xf32>
    %c0_3 = arith.constant 0 : index
    %c0_4 = arith.constant 0 : index
    %3 = vector.load %arg3[%c0_3, %c0_4] : memref<1x128xf32, #tpu.memory_space<vmem>>, vector<1x128xf32>
    %4 = vector.broadcast %3 : vector<1x128xf32> to vector<16x128xf32>
    %5 = arith.addf %2, %4 : vector<16x128xf32>
    %cst_5 = arith.constant 0.000000e+00 : f32
    %6 = vector.broadcast %cst_5 : f32 to vector<16x128xf32>
    %7 = arith.maximumf %5, %6 : vector<16x128xf32>
    %8 = arith.truncf %7 : vector<16x128xf32> to vector<16x128xbf16>
    %c0_6 = arith.constant 0 : index
    %c0_7 = arith.constant 0 : index
    %9 = vector.load %arg4[%c0_6, %c0_7] : memref<128x128xbf16, #tpu.memory_space<vmem>>, vector<128x128xbf16>
    %cst_8 = arith.constant dense<0.000000e+00> : vector<16x128xf32>
    %10 = tpu.matmul %8, %9, %cst_8 {dimension_numbers = #tpu.dot_dimension_numbers<[1], [0], [0], [1], [0, 0, 1, 1], [], []>} : vector<16x128xbf16>, vector<128x128xbf16>, vector<16x128xf32> -> vector<16x128xf32>
    %c0_9 = arith.constant 0 : index
    %c0_10 = arith.constant 0 : index
    %11 = vector.load %arg5[%c0_9, %c0_10] : memref<1x128xf32, #tpu.memory_space<vmem>>, vector<1x128xf32>
    %12 = vector.broadcast %11 : vector<1x128xf32> to vector<16x128xf32>
    %13 = arith.addf %10, %12 : vector<16x128xf32>
    %cst_11 = arith.constant 0.000000e+00 : f32
    %14 = vector.broadcast %cst_11 : f32 to vector<16x128xf32>
    %15 = arith.maximumf %13, %14 : vector<16x128xf32>
    %16 = arith.truncf %15 : vector<16x128xf32> to vector<16x128xbf16>
    %c0_12 = arith.constant 0 : index
    %c0_13 = arith.constant 0 : index
    %17 = vector.load %arg6[%c0_12, %c0_13] : memref<128x128xbf16, #tpu.memory_space<vmem>>, vector<128x128xbf16>
    %cst_14 = arith.constant dense<0.000000e+00> : vector<16x128xf32>
    %18 = tpu.matmul %16, %17, %cst_14 {dimension_numbers = #tpu.dot_dimension_numbers<[1], [0], [0], [1], [0, 0, 1, 1], [], []>} : vector<16x128xbf16>, vector<128x128xbf16>, vector<16x128xf32> -> vector<16x128xf32>
    %c0_15 = arith.constant 0 : index
    %c0_16 = arith.constant 0 : index
    %19 = vector.load %arg7[%c0_15, %c0_16] : memref<1x128xf32, #tpu.memory_space<vmem>>, vector<1x128xf32>
    %20 = vector.broadcast %19 : vector<1x128xf32> to vector<16x128xf32>
    %21 = arith.addf %18, %20 : vector<16x128xf32>
    %22 = arith.truncf %21 : vector<16x128xf32> to vector<16x128xbf16>
    %c0_17 = arith.constant 0 : index
    %c0_18 = arith.constant 0 : index
    %23 = vector.load %arg8[%c0_17, %c0_18] : memref<16x128xbf16, #tpu.memory_space<vmem>>, vector<16x128xbf16>
    tpu.vector_store %arg8[%c0_17, %c0_18], %22 {strides = array<i32>} : memref<16x128xbf16, #tpu.memory_space<vmem>>, vector<16x128xbf16>,
    return
  }
  func.func @transform_0(%arg0: i32) -> (i32, i32) {
    %c0_i32 = arith.constant 0 : i32
    %c0_i32_0 = arith.constant 0 : i32
    return %arg0, %c0_i32 : i32, i32
  }
  func.func @transform_1(%arg0: i32) -> (i32, i32) {
    %c0_i32 = arith.constant 0 : i32
    %c0_i32_0 = arith.constant 0 : i32
    %c0_i32_1 = arith.constant 0 : i32
    return %c0_i32, %c0_i32_0 : i32, i32
  }
  func.func @transform_2(%arg0: i32) -> (i32, i32) {
    %c0_i32 = arith.constant 0 : i32
    %c0_i32_0 = arith.constant 0 : i32
    %c0_i32_1 = arith.constant 0 : i32
    return %c0_i32, %c0_i32_0 : i32, i32
  }
  func.func @transform_3(%arg0: i32) -> (i32, i32) {
    %c0_i32 = arith.constant 0 : i32
    %c0_i32_0 = arith.constant 0 : i32
    %c0_i32_1 = arith.constant 0 : i32
    return %c0_i32, %c0_i32_0 : i32, i32
  }
  func.func @transform_4(%arg0: i32) -> (i32, i32) {
    %c0_i32 = arith.constant 0 : i32
    %c0_i32_0 = arith.constant 0 : i32
    %c0_i32_1 = arith.constant 0 : i32
    return %c0_i32, %c0_i32_0 : i32, i32
  }
  func.func @transform_5(%arg0: i32) -> (i32, i32) {
    %c0_i32 = arith.constant 0 : i32
    %c0_i32_0 = arith.constant 0 : i32
    %c0_i32_1 = arith.constant 0 : i32
    return %c0_i32, %c0_i32_0 : i32, i32
  }
  func.func @transform_6(%arg0: i32) -> (i32, i32) {
    %c0_i32 = arith.constant 0 : i32
    %c0_i32_0 = arith.constant 0 : i32
    %c0_i32_1 = arith.constant 0 : i32
    return %c0_i32, %c0_i32_0 : i32, i32
  }
  func.func @transform_7(%arg0: i32) -> (i32, i32) {
    %c0_i32 = arith.constant 0 : i32
    %c0_i32_0 = arith.constant 0 : i32
    return %arg0, %c0_i32 : i32, i32
  }
}

</mosaic_0001>

<bundles_post_ra>
// kernel: tpu_custom_call.1
= control target key start
LH: loop header
LB: loop body
LE: loop exit
PB: predicated region body
PF: predicated region fallthrough
CT: control target
= control target key end

     0   :  { %12 = vsyncpa [#allocation3], 0  ;;  %s729_s0 = inlined_call_operand.hbm [shape: bf16[16,128], index: 0, kind: input, shape index: {}]   ;;  %s730_s1 = inlined_call_operand.hbm [shape: bf16[128,128], index: 1, kind: input, shape index: {}]   ;;  %s731_s2 = inlined_call_operand.vmem [shape: f32[1,128], index: 2, kind: input, shape index: {}]   ;;  %s732_s3 = inlined_call_operand.hbm [shape: bf16[128,128], index: 3, kind: input, shape index: {}]   ;;  %s733_s4 = inlined_call_operand.vmem [shape: f32[1,128], index: 4, kind: input, shape index: {}]   ;;  %s734_s5 = inlined_call_operand.hbm [shape: bf16[128,128], index: 5, kind: input, shape index: {}]   ;;  %s735_s6 = inlined_call_operand.vmem [shape: f32[1,128], index: 6, kind: input, shape index: {}]   ;;  %s736_s7 = inlined_call_operand.hbm [shape: bf16[16,128], index: 7, kind: output, shape index: {}]  }
   0x1   :  { %13 = vsyncpa [#allocation6], 0 }
   0x2   :  { %14 = vsyncpa [#allocation9], 0 }
   0x3   :  { %15 = vsyncpa [#allocation4], 0  ;;  %s33_s26 = sshll.u32 %s730_s1, 4  ;;  %s643_s27 = smov [#allocation5]   ;;  %s34_s26 = int_to_ptr.hbm [resolvable:$true] %s33_s26 }
   0x4   :  { %s35_s28 = sshll.u32 %s643_s27, 4  ;;  %s20_s8 = sshll.u32 %s729_s0, 4  ;;  %s36_s28 = int_to_ptr.vmem [resolvable:$true] %s35_s28  ;;  %s21_s8 = int_to_ptr.hbm [resolvable:$true] %s20_s8 }
   0x5   :  { %s644_s9 = smov 64   ;;  %s645_s10 = smov 4  }
   0x6   :  { %41 = dma.hbm_to_vmem [thread:$0]  %s34_s26, 1024, %s36_s28, [#allocation6], %s644_s9, %s644_s9, %s645_s10  }
   0x7   :  { %s646_s11 = smov [#allocation2]   ;;  %s48_s1 = sshll.u32 %s732_s3, 4  ;;  %s49_s1 = int_to_ptr.hbm [resolvable:$true] %s48_s1 }
   0x8   :  { %s22_s12 = sshll.u32 %s646_s11, 4  ;;  %s63_s16 = sshll.u32 %s734_s5, 4  ;;  %s23_s12 = int_to_ptr.vmem [resolvable:$true] %s22_s12  ;;  %s64_s16 = int_to_ptr.hbm [resolvable:$true] %s63_s16 }
   0x9   :  { %28 = dma.hbm_to_vmem [thread:$0]  %s21_s8, 128, %s23_s12, [#allocation3], %s644_s9, %s644_s9, %s645_s10  }
   0xa   :  { %s647_s17 = smov [#allocation7]   ;;  %s648_s19 = smov [#allocation8]  }
   0xb   :  { %s50_s18 = sshll.u32 %s647_s17, 4  ;;  %s65_s3 = sshll.u32 %s648_s19, 4  ;;  %s51_s18 = int_to_ptr.vmem [resolvable:$true] %s50_s18  ;;  %s66_s3 = int_to_ptr.vmem [resolvable:$true] %s65_s3 }
   0xc   :  { %56 = dma.hbm_to_vmem [thread:$0]  %s49_s1, 1024, %s51_s18, [#allocation6], %s644_s9, %s644_s9, %s645_s10  }
   0xd   :  { %71 = dma.hbm_to_vmem [thread:$0]  %s64_s16, 1024, %s66_s3, [#allocation9], %s644_s9, %s644_s9, %s645_s10  }
   0xe   :  { %635 = dma.done.wait [#allocation3], 128  }
   0xf   :  { %636 = vsyncadd [#allocation3], 4294967168 }
  0x10   :  { %637 = dma.done.wait [#allocation6], 2048  }
  0x11   :  { %638 = vsyncadd [#allocation6], 4294965248 }
  0x12   :  { %639 = dma.done.wait [#allocation9], 1024  }
  0x13   :  { %640 = vsyncadd [#allocation9], 4294966272  ;;  %v483_v0 = vld [vmem:[#allocation5 + $0x38] sm:$0xff]  ;;  %v482_v1 = vld [vmem:[#allocation5 + $0x30] sm:$0xff]  ;;  %s649_s24 = smov [#allocation10]   ;;  %s360_s28 = sshll.u32 %s736_s7, 4  ;;  %s361_s28 = int_to_ptr.hbm [resolvable:$true] %s360_s28 }
  0x14   :  { %166 = vmatpush.bf16.msra.mxu0 %v483_v0  ;;  %v491_v2 = vld [vmem:[#allocation7 + $0x38] sm:$0xff]  ;;  %v490_v3 = vld [vmem:[#allocation7 + $0x30] sm:$0xff]  ;;  %v481_v4 = vld [vmem:[#allocation5 + $0x28] sm:$0xff]  ;;  %s358_s25 = sshll.u32 %s649_s24, 4  ;;  %s359_s25 = int_to_ptr.vmem [resolvable:$true] %s358_s25 }
  0x15   :  { %251 = vmatpush.bf16.msra.mxu1 %v491_v2  ;;  %v489_v5 = vld [vmem:[#allocation7 + $0x28] sm:$0xff]  ;;  %v480_v6 = vld [vmem:[#allocation5 + $0x20] sm:$0xff]  ;;  %v479_v8 = vld [vmem:[#allocation5 + $0x18] sm:$0xff] }
  0x16   :  { %v488_v7 = vld [vmem:[#allocation7 + $0x20] sm:$0xff]  ;;  %v478_v9 = vld [vmem:[#allocation5 + $0x10] sm:$0xff]  ;;  %v477_v10 = vld [vmem:[#allocation5 + $0x8] sm:$0xff] }
  0x17   :  { %v476_v11 = vld [vmem:[#allocation5] sm:$0xff]  ;;  %v475_v12 = vld [vmem:[#allocation2] sm:$0xff]  ;;  %v486_v14 = vld [vmem:[#allocation7 + $0x10] sm:$0xff] }
  0x18   :  { %167 = vmatpush.bf16.msra.mxu0 %v482_v1  ;;  %v487_v13 = vld [vmem:[#allocation7 + $0x18] sm:$0xff]  ;;  %v485_v15 = vld [vmem:[#allocation7 + $0x8] sm:$0xff]  ;;  %v484_v16 = vld [vmem:[#allocation7] sm:$0xff] }
  0x19   :  { %252 = vmatpush.bf16.msra.mxu1 %v490_v3  ;;  %v499_v17 = vld [vmem:[#allocation8 + $0x38] sm:$0xff]  ;;  %v498_v18 = vld [vmem:[#allocation8 + $0x30] sm:$0xff]  ;;  %v497_v19 = vld [vmem:[#allocation8 + $0x28] sm:$0xff] }
  0x1a   :  { %336 = vmatpush.bf16.msra.mxu2 %v499_v17  ;;  %v496_v20 = vld [vmem:[#allocation8 + $0x20] sm:$0xff]  ;;  %v512_v22 = vld [vmem:[%s731_s2] ss:$0 sm:$0xff]  ;;  %v494_v30 = vld [vmem:[#allocation8 + $0x10] sm:$0xff] }
  0x1b   :  { %v495_v29 = vld [vmem:[#allocation8 + $0x18] sm:$0xff]  ;;  %v493_v31 = vld [vmem:[#allocation8 + $0x8] sm:$0xff]  ;;  %v492_v32 = vld [vmem:[#allocation8] sm:$0xff] }
  0x1c   :  { %168 = vmatpush.bf16.msra.mxu0 %v481_v4  ;;  %v513_v34 = vld [vmem:[%s733_s4] ss:$0 sm:$0xff] }
  0x1d   :  { %253 = vmatpush.bf16.msra.mxu1 %v489_v5  ;;  %v514_v42 = vld [vmem:[%s735_s6] ss:$0 sm:$0xff] }
  0x1e   :  { %337 = vmatpush.bf16.msra.mxu2 %v498_v18 }
  0x20   :  { %169 = vmatpush.bf16.msra.mxu0 %v480_v6 }
  0x21   :  { %254 = vmatpush.bf16.msra.mxu1 %v488_v7 }
  0x22   :  { %338 = vmatpush.bf16.msra.mxu2 %v497_v19 }
  0x24   :  { %170 = vmatpush.bf16.msra.mxu0 %v479_v8 }
  0x25   :  { %255 = vmatpush.bf16.msra.mxu1 %v487_v13 }
  0x26   :  { %339 = vmatpush.bf16.msra.mxu2 %v496_v20 }
  0x28   :  { %171 = vmatpush.bf16.msra.mxu0 %v478_v9 }
  0x29   :  { %256 = vmatpush.bf16.msra.mxu1 %v486_v14 }
  0x2a   :  { %340 = vmatpush.bf16.msra.mxu2 %v495_v29 }
  0x2c   :  { %172 = vmatpush.bf16.msra.mxu0 %v477_v10 }
  0x2d   :  { %257 = vmatpush.bf16.msra.mxu1 %v485_v15 }
  0x2e   :  { %341 = vmatpush.bf16.msra.mxu2 %v494_v30 }
  0x30   :  { %173 = vmatpush.bf16.msra.mxu0 %v476_v11 }
  0x31   :  { %258 = vmatpush.bf16.msra.mxu1 %v484_v16 }
  0x32   :  { %342 = vmatpush.bf16.msra.mxu2 %v493_v31 }
  0x33   :  { %174 = vmatmul.bf16.vlgmr.msra.gmra.mxu0 %v475_v12 }
  0x36   :  { %343 = vmatpush.bf16.msra.mxu2 %v492_v32 }
  0xb0   :  { %v175_v21 = vpop.f32.mrf.mxu0 }
  0xb1   :  { %v176_v23 = vadd.f32 %v512_v22, %v175_v21 }
  0xb3   :  { %v180_v26 = vmax.f32 %v176_v23, 0.0 }
  0xb8   :  { %v177_v24 = vpop.f32.mrf.mxu0 }
  0xb9   :  { %v178_v25 = vadd.f32 %v512_v22, %v177_v24 }
  0xbb   :  { %v181_v27 = vmax.f32 %v178_v25, 0.0 }
  0xbd   :  { %v182_v28 = vpack.c.bf16 %v181_v27, %v180_v26 }
  0xbf   :  { %259 = vmatmul.bf16.vlgmr.msra.gmra.mxu1 %v182_v28 }
 0x13c   :  { %v260_v33 = vpop.f32.mrf.mxu1 }
 0x13d   :  { %v261_v35 = vadd.f32 %v513_v34, %v260_v33 }
 0x13f   :  { %v265_v38 = vmax.f32 %v261_v35, 0.0 }
 0x144   :  { %v262_v36 = vpop.f32.mrf.mxu1 }
 0x145   :  { %v263_v37 = vadd.f32 %v513_v34, %v262_v36 }
 0x147   :  { %v266_v39 = vmax.f32 %v263_v37, 0.0 }
 0x149   :  { %v267_v40 = vpack.c.bf16 %v266_v39, %v265_v38 }
 0x14b   :  { %344 = vmatmul.bf16.vlgmr.msra.gmra.mxu2 %v267_v40 }
 0x1ce   :  { %v345_v41 = vpop.f32.mrf.mxu2 }
 0x1cf   :  { %v346_v44 = vadd.f32 %v514_v42, %v345_v41 }
 0x1d6   :  { %v347_v43 = vpop.f32.mrf.mxu2 }
 0x1d7   :  { %v348_v45 = vadd.f32 %v514_v42, %v347_v43 }
 0x1d9   :  { %v503_v46 = vpack.c.bf16 %v348_v45, %v346_v44 }
 0x1db   :  { %504 = vst [vmem:[#allocation10] sm:$0xff] %v503_v46  }
 0x1dc   :  { %366 = dma.vmem_to_hbm [thread:$0]  %s359_s25, 128, %s361_s28, [#allocation4], %s644_s9, %s644_s9, %s645_s10  }
 0x1dd   :  { %641 = dma.done.wait [#allocation4], 128  }
 0x1de   :  { %642 = vsyncadd [#allocation4], 4294967168 }
 0x1df   :  { %371 = vsyncpa [#allocation3], 1 }
 0x1e0   :  { %372 = vsyncpa [#allocation6], 1 }
 0x1e1   :  { %373 = vsyncpa [#allocation9], 1 }
 0x1e2   :  { %374 = vsyncpa [#allocation4], 1 }

// kernel: tpu_custom_call.1
= control target key start
LH: loop header
LB: loop body
LE: loop exit
PB: predicated region body
PF: predicated region fallthrough
CT: control target
= control target key end

     0   :  { %12 = vsyncpa [#allocation3], 0  ;;  %s729_s0 = inlined_call_operand.hbm [shape: bf16[16,128], index: 0, kind: input, shape index: {}]   ;;  %s730_s1 = inlined_call_operand.hbm [shape: bf16[128,128], index: 1, kind: input, shape index: {}]   ;;  %s731_s2 = inlined_call_operand.vmem [shape: f32[1,128], index: 2, kind: input, shape index: {}]   ;;  %s732_s3 = inlined_call_operand.hbm [shape: bf16[128,128], index: 3, kind: input, shape index: {}]   ;;  %s733_s4 = inlined_call_operand.vmem [shape: f32[1,128], index: 4, kind: input, shape index: {}]   ;;  %s734_s5 = inlined_call_operand.hbm [shape: bf16[128,128], index: 5, kind: input, shape index: {}]   ;;  %s735_s6 = inlined_call_operand.vmem [shape: f32[1,128], index: 6, kind: input, shape index: {}]   ;;  %s736_s7 = inlined_call_operand.hbm [shape: bf16[16,128], index: 7, kind: output, shape index: {}]  }
   0x1   :  { %13 = vsyncpa [#allocation6], 0 }
   0x2   :  { %14 = vsyncpa [#allocation9], 0 }
   0x3   :  { %15 = vsyncpa [#allocation4], 0  ;;  %s33_s26 = sshll.u32 %s730_s1, 4  ;;  %s643_s27 = smov [#allocation5]   ;;  %s34_s26 = int_to_ptr.hbm [resolvable:$true] %s33_s26 }
   0x4   :  { %s35_s28 = sshll.u32 %s643_s27, 4  ;;  %s20_s8 = sshll.u32 %s729_s0, 4  ;;  %s36_s28 = int_to_ptr.vmem [resolvable:$true] %s35_s28  ;;  %s21_s8 = int_to_ptr.hbm [resolvable:$true] %s20_s8 }
   0x5   :  { %s644_s9 = smov 64   ;;  %s645_s10 = smov 4  }
   0x6   :  { %41 = dma.hbm_to_vmem [thread:$0]  %s34_s26, 1024, %s36_s28, [#allocation6], %s644_s9, %s644_s9, %s645_s10  }
   0x7   :  { %s646_s11 = smov [#allocation2]   ;;  %s48_s1 = sshll.u32 %s732_s3, 4  ;;  %s49_s1 = int_to_ptr.hbm [resolvable:$true] %s48_s1 }
   0x8   :  { %s22_s12 = sshll.u32 %s646_s11, 4  ;;  %s63_s16 = sshll.u32 %s734_s5, 4  ;;  %s23_s12 = int_to_ptr.vmem [resolvable:$true] %s22_s12  ;;  %s64_s16 = int_to_ptr.hbm [resolvable:$true] %s63_s16 }
   0x9   :  { %28 = dma.hbm_to_vmem [thread:$0]  %s21_s8, 128, %s23_s12, [#allocation3], %s644_s9, %s644_s9, %s645_s10  }
   0xa   :  { %s647_s17 = smov [#allocation7]   ;;  %s648_s19 = smov [#allocation8]  }
   0xb   :  { %s50_s18 = sshll.u32 %s647_s17, 4  ;;  %s65_s3 = sshll.u32 %s648_s19, 4  ;;  %s51_s18 = int_to_ptr.vmem [resolvable:$true] %s50_s18  ;;  %s66_s3 = int_to_ptr.vmem [resolvable:$true] %s65_s3 }
   0xc   :  { %56 = dma.hbm_to_vmem [thread:$0]  %s49_s1, 1024, %s51_s18, [#allocation6], %s644_s9, %s644_s9, %s645_s10  }
   0xd   :  { %71 = dma.hbm_to_vmem [thread:$0]  %s64_s16, 1024, %s66_s3, [#allocation9], %s644_s9, %s644_s9, %s645_s10  }
   0xe   :  { %635 = dma.done.wait [#allocation3], 128  }
   0xf   :  { %636 = vsyncadd [#allocation3], 4294967168 }
  0x10   :  { %637 = dma.done.wait [#allocation6], 2048  }
  0x11   :  { %638 = vsyncadd [#allocation6], 4294965248 }
  0x12   :  { %639 = dma.done.wait [#allocation9], 1024  }
  0x13   :  { %640 = vsyncadd [#allocation9], 4294966272  ;;  %v483_v0 = vld [vmem:[#allocation5 + $0x38] sm:$0xff]  ;;  %v482_v1 = vld [vmem:[#allocation5 + $0x30] sm:$0xff]  ;;  %s649_s24 = smov [#allocation10]   ;;  %s360_s28 = sshll.u32 %s736_s7, 4  ;;  %s361_s28 = int_to_ptr.hbm [resolvable:$true] %s360_s28 }
  0x14   :  { %166 = vmatpush.bf16.msra.mxu0 %v483_v0  ;;  %v491_v2 = vld [vmem:[#allocation7 + $0x38] sm:$0xff]  ;;  %v490_v3 = vld [vmem:[#allocation7 + $0x30] sm:$0xff]  ;;  %v481_v4 = vld [vmem:[#allocation5 + $0x28] sm:$0xff]  ;;  %s358_s25 = sshll.u32 %s649_s24, 4  ;;  %s359_s25 = int_to_ptr.vmem [resolvable:$true] %s358_s25 }
  0x15   :  { %251 = vmatpush.bf16.msra.mxu1 %v491_v2  ;;  %v489_v5 = vld [vmem:[#allocation7 + $0x28] sm:$0xff]  ;;  %v480_v6 = vld [vmem:[#allocation5 + $0x20] sm:$0xff]  ;;  %v479_v8 = vld [vmem:[#allocation5 + $0x18] sm:$0xff] }
  0x16   :  { %v488_v7 = vld [vmem:[#allocation7 + $0x20] sm:$0xff]  ;;  %v478_v9 = vld [vmem:[#allocation5 + $0x10] sm:$0xff]  ;;  %v477_v10 = vld [vmem:[#allocation5 + $0x8] sm:$0xff] }
  0x17   :  { %v476_v11 = vld [vmem:[#allocation5] sm:$0xff]  ;;  %v475_v12 = vld [vmem:[#allocation2] sm:$0xff]  ;;  %v486_v14 = vld [vmem:[#allocation7 + $0x10] sm:$0xff] }
  0x18   :  { %167 = vmatpush.bf16.msra.mxu0 %v482_v1  ;;  %v487_v13 = vld [vmem:[#allocation7 + $0x18] sm:$0xff]  ;;  %v485_v15 = vld [vmem:[#allocation7 + $0x8] sm:$0xff]  ;;  %v484_v16 = vld [vmem:[#allocation7] sm:$0xff] }
  0x19   :  { %252 = vmatpush.bf16.msra.mxu1 %v490_v3  ;;  %v499_v17 = vld [vmem:[#allocation8 + $0x38] sm:$0xff]  ;;  %v498_v18 = vld [vmem:[#allocation8 + $0x30] sm:$0xff]  ;;  %v497_v19 = vld [vmem:[#allocation8 + $0x28] sm:$0xff] }
  0x1a   :  { %336 = vmatpush.bf16.msra.mxu2 %v499_v17  ;;  %v496_v20 = vld [vmem:[#allocation8 + $0x20] sm:$0xff]  ;;  %v512_v22 = vld [vmem:[%s731_s2] ss:$0 sm:$0xff]  ;;  %v494_v30 = vld [vmem:[#allocation8 + $0x10] sm:$0xff] }
  0x1b   :  { %v495_v29 = vld [vmem:[#allocation8 + $0x18] sm:$0xff]  ;;  %v493_v31 = vld [vmem:[#allocation8 + $0x8] sm:$0xff]  ;;  %v492_v32 = vld [vmem:[#allocation8] sm:$0xff] }
  0x1c   :  { %168 = vmatpush.bf16.msra.mxu0 %v481_v4  ;;  %v513_v34 = vld [vmem:[%s733_s4] ss:$0 sm:$0xff] }
  0x1d   :  { %253 = vmatpush.bf16.msra.mxu1 %v489_v5  ;;  %v514_v42 = vld [vmem:[%s735_s6] ss:$0 sm:$0xff] }
  0x1e   :  { %337 = vmatpush.bf16.msra.mxu2 %v498_v18 }
  0x20   :  { %169 = vmatpush.bf16.msra.mxu0 %v480_v6 }
  0x21   :  { %254 = vmatpush.bf16.msra.mxu1 %v488_v7 }
  0x22   :  { %338 = vmatpush.bf16.msra.mxu2 %v497_v19 }
  0x24   :  { %170 = vmatpush.bf16.msra.mxu0 %v479_v8 }
  0x25   :  { %255 = vmatpush.bf16.msra.mxu1 %v487_v13 }
  0x26   :  { %339 = vmatpush.bf16.msra.mxu2 %v496_v20 }
  0x28   :  { %171 = vmatpush.bf16.msra.mxu0 %v478_v9 }
  0x29   :  { %256 = vmatpush.bf16.msra.mxu1 %v486_v14 }
  0x2a   :  { %340 = vmatpush.bf16.msra.mxu2 %v495_v29 }
  0x2c   :  { %172 = vmatpush.bf16.msra.mxu0 %v477_v10 }
  0x2d   :  { %257 = vmatpush.bf16.msra.mxu1 %v485_v15 }
  0x2e   :  { %341 = vmatpush.bf16.msra.mxu2 %v494_v30 }
  0x30   :  { %173 = vmatpush.bf16.msra.mxu0 %v476_v11 }
  0x31   :  { %258 = vmatpush.bf16.msra.mxu1 %v484_v16 }
  0x32   :  { %342 = vmatpush.bf16.msra.mxu2 %v493_v31 }
  0x33   :  { %174 = vmatmul.bf16.vlgmr.msra.gmra.mxu0 %v475_v12 }
  0x36   :  { %343 = vmatpush.bf16.msra.mxu2 %v492_v32 }
  0xb0   :  { %v175_v21 = vpop.f32.mrf.mxu0 }
  0xb1   :  { %v176_v23 = vadd.f32 %v512_v22, %v175_v21 }
  0xb3   :  { %v180_v26 = vmax.f32 %v176_v23, 0.0 }
  0xb8   :  { %v177_v24 = vpop.f32.mrf.mxu0 }
  0xb9   :  { %v178_v25 = vadd.f32 %v512_v22, %v177_v24 }
  0xbb   :  { %v181_v27 = vmax.f32 %v178_v25, 0.0 }
  0xbd   :  { %v182_v28 = vpack.c.bf16 %v181_v27, %v180_v26 }
  0xbf   :  { %259 = vmatmul.bf16.vlgmr.msra.gmra.mxu1 %v182_v28 }
 0x13c   :  { %v260_v33 = vpop.f32.mrf.mxu1 }
 0x13d   :  { %v261_v35 = vadd.f32 %v513_v34, %v260_v33 }
 0x13f   :  { %v265_v38 = vmax.f32 %v261_v35, 0.0 }
 0x144   :  { %v262_v36 = vpop.f32.mrf.mxu1 }
 0x145   :  { %v263_v37 = vadd.f32 %v513_v34, %v262_v36 }
 0x147   :  { %v266_v39 = vmax.f32 %v263_v37, 0.0 }
 0x149   :  { %v267_v40 = vpack.c.bf16 %v266_v39, %v265_v38 }
 0x14b   :  { %344 = vmatmul.bf16.vlgmr.msra.gmra.mxu2 %v267_v40 }
 0x1ce   :  { %v345_v41 = vpop.f32.mrf.mxu2 }
 0x1cf   :  { %v346_v44 = vadd.f32 %v514_v42, %v345_v41 }
 0x1d6   :  { %v347_v43 = vpop.f32.mrf.mxu2 }
 0x1d7   :  { %v348_v45 = vadd.f32 %v514_v42, %v347_v43 }
 0x1d9   :  { %v503_v46 = vpack.c.bf16 %v348_v45, %v346_v44 }
 0x1db   :  { %504 = vst [vmem:[#allocation10] sm:$0xff] %v503_v46  }
 0x1dc   :  { %366 = dma.vmem_to_hbm [thread:$0]  %s359_s25, 128, %s361_s28, [#allocation4], %s644_s9, %s644_s9, %s645_s10  }
 0x1dd   :  { %641 = dma.done.wait [#allocation4], 128  }
 0x1de   :  { %642 = vsyncadd [#allocation4], 4294967168 }
 0x1df   :  { %371 = vsyncpa [#allocation3], 1 }
 0x1e0   :  { %372 = vsyncpa [#allocation6], 1 }
 0x1e1   :  { %373 = vsyncpa [#allocation9], 1 }
 0x1e2   :  { %374 = vsyncpa [#allocation4], 1 }

</bundles_post_ra>
